<compile_context>
chip_gen: v6e
topology: v6e:2x2x1
jax: 0.10.0
libtpu: 0.0.40
codegen_flags: <defaults>
</compile_context>

<pallas_src>
import functools

import jax
import jax.numpy as jnp
from jax import lax
from jax.experimental import pallas as pl
from jax.experimental.pallas import tpu as pltpu


# ----------------------------------------------------------------------------
# Helpers
# ----------------------------------------------------------------------------
def _pick_tile_d(d_out, max_tile=256):
    """Largest multiple-of-128 divisor of d_out <= max_tile, preferring >=2
    output stripes so the 'parallel' grid axis can be megacore-sharded."""
    if d_out % 128 != 0:
        return d_out
    cap = min(max_tile, d_out if d_out // 128 < 2 else d_out // 2)
    cap -= cap % 128
    t = max(cap, 128)
    while t > 128 and d_out % t != 0:
        t -= 128
    return t


def _pick_tile_n(n, max_tile=512):
    """Multiple-of-8 divisor of n close to max_tile (for the N-tiled path)."""
    if n <= max_tile:
        return n
    t = max_tile - (max_tile % 8)
    while t >= 8 and n % t != 0:
        t -= 8
    return t if (t >= 8 and n % t == 0) else n


def _vmem_limit_bytes(est_bytes):
    """Request ~2x the tile estimate, capped below physical VMEM capacity
    (128 MiB on v5e/v6e, 64 MiB on v7x) minus headroom for Mosaic scratch."""
    cap = 64 * 1024 * 1024
    try:
        cap = int(pltpu.get_tpu_info().vmem_capacity_bytes)
    except Exception:
        pass
    hi = max(cap - 8 * 1024 * 1024, 16 * 1024 * 1024)
    return int(min(max(2 * est_bytes, 32 * 1024 * 1024), hi))


# ----------------------------------------------------------------------------
# Parameter preparation (hoisted out of the per-call path)
# ----------------------------------------------------------------------------
def prepare_projector_params(w, gamma, beta, bias=None):
    """w: (D_out, D_in) PyTorch Linear layout. Returns (W^T bf16, [gamma;beta] f32).

    The Linear bias is intentionally unused: under training-mode BatchNorm it
    cancels exactly in the mean subtraction (it would only matter for the
    untracked running-mean buffer)."""
    del bias
    wt = jnp.asarray(w).T.astype(jnp.bfloat16)               # (D_in, D_out)
    params = jnp.stack([gamma, beta]).astype(jnp.float32)    # (2, D_out)
    return wt, params


def prepare_fc_params(w, b):
    """Pad classes up to a lane-dense multiple of 128 and pre-transpose."""
    c, d = w.shape
    c_pad = ((c + 127) // 128) * 128
    wt = jnp.zeros((d, c_pad), dtype=w.dtype).at[:, :c].set(jnp.asarray(w).T)
    b2 = jnp.zeros((1, c_pad), dtype=b.dtype).at[0, :c].set(b)
    return wt, b2, c


# ----------------------------------------------------------------------------
# Fused Projector kernel: y = relu(batchnorm_train(x @ W^T))   (bias cancels)
# Whole batch N resident per D_out stripe (small / medium bags).
# ----------------------------------------------------------------------------
def _projector_fused_kernel(x_ref, w_ref, p_ref, o_ref, *, eps):
    # (N, D_in)bf16 @ (D_in, TILE_D)bf16 -> f32 on the MXU.
    y = jnp.dot(x_ref[...], w_ref[...], preferred_element_type=jnp.float32)
    # Linear bias is NOT added: training-mode BN removes it exactly.
    mean = jnp.mean(y, axis=0, keepdims=True)                # (1, TILE_D)
    centered = y - mean
    var = jnp.mean(centered * centered, axis=0, keepdims=True)
    inv_std = lax.rsqrt(var + eps)                           # EUP slot
    gamma = p_ref[0:1, :]
    beta = p_ref[1:2, :]
    o_ref[...] = jnp.maximum(centered * (gamma * inv_std) + beta, 0.0).astype(
        o_ref.dtype
    )


def projector_forward(x, wt_bf16, bn_params, *, eps=1e-5, tile_d=None):
    """Fused Linear -> BatchNorm1d(train) -> ReLU, whole N resident.

    x: (N, D_in); wt_bf16: (D_in, D_out) bf16; bn_params: (2, D_out) f32.
    """
    n, d_in = x.shape
    d_in_w, d_out = wt_bf16.shape
    assert d_in == d_in_w
    if tile_d is None:
        tile_d = _pick_tile_d(d_out)
    assert d_out % tile_d == 0

    x_bf = x.astype(jnp.bfloat16)

    est = (
        2 * n * d_in * 2                 # resident x (conservative 2x)
        + 2 * d_in * tile_d * 2          # W^T stripe, double-buffered
        + 2 * 2 * tile_d * 4             # gamma / beta
        + 2 * n * tile_d * x.dtype.itemsize  # output stripe, double-buffered
        + n * tile_d * 4                 # f32 matmul result
    )

    return pl.pallas_call(
        functools.partial(_projector_fused_kernel, eps=eps),
        out_shape=jax.ShapeDtypeStruct((n, d_out), x.dtype),
        grid=(d_out // tile_d,),
        in_specs=[
            pl.BlockSpec((n, d_in), lambda j: (0, 0)),        # x: one DMA, stays resident
            pl.BlockSpec((d_in, tile_d), lambda j: (0, j)),   # W^T stripe
            pl.BlockSpec((2, tile_d), lambda j: (0, j)),      # gamma / beta
        ],
        out_specs=pl.BlockSpec((n, tile_d), lambda j: (0, j)),
        compiler_params=pltpu.CompilerParams(
            dimension_semantics=("parallel",),
            vmem_limit_bytes=_vmem_limit_bytes(est),
        ),
    )(x_bf, wt_bf16, bn_params)


# ----------------------------------------------------------------------------
# Two-pass N-tiled variant for large WSI bags (VMEM-bounded on v7x):
#   pass 1: y = x @ W^T (bf16) + accumulate per-feature [sum; sumsq]
#   pass 2: normalize with batch stats, affine, ReLU
# ----------------------------------------------------------------------------
def _matmul_stats_kernel(x_ref, w_ref, y_ref, stats_ref):
    i = pl.program_id(1)  # N-tile index (reduction axis for the stats)
    y = jnp.dot(x_ref[...], w_ref[...], preferred_element_type=jnp.float32)
    y_ref[...] = y.astype(y_ref.dtype)

    @pl.when(i == 0)
    def _():
        stats_ref[...] = jnp.zeros_like(stats_ref)

    stats_ref[...] += jnp.concatenate(
        [jnp.sum(y, axis=0, keepdims=True),
         jnp.sum(y * y, axis=0, keepdims=True)],
        axis=0,
    )


def _bn_apply_kernel(y_ref, stats_ref, p_ref, o_ref, *, eps, inv_n):
    stats = stats_ref[...]
    mean = stats[0:1, :] * inv_n
    var = jnp.maximum(stats[1:2, :] * inv_n - mean * mean, 0.0)
    inv_std = lax.rsqrt(var + eps)
    gamma = p_ref[0:1, :]
    beta = p_ref[1:2, :]
    scale = gamma * inv_std
    shift = beta - mean * scale
    o_ref[...] = jnp.maximum(
        y_ref[...].astype(jnp.float32) * scale + shift, 0.0
    ).astype(o_ref.dtype)


def projector_forward_tiled(x, wt_bf16, bn_params, *, eps=1e-5, tile_d=None,
                            tile_n=None):
    """Same math as projector_forward, but N-tiled (stats via sum/sumsq)."""
    n, d_in = x.shape
    d_in_w, d_out = wt_bf16.shape
    assert d_in == d_in_w
    if tile_d is None:
        tile_d = _pick_tile_d(d_out)
    if tile_n is None:
        tile_n = _pick_tile_n(n)
    assert d_out % tile_d == 0 and n % tile_n == 0 and tile_n % 8 == 0

    x_bf = x.astype(jnp.bfloat16)

    est1 = (
        2 * tile_n * d_in * 2
        + 2 * d_in * tile_d * 2
        + 2 * tile_n * tile_d * 2
        + 2 * 2 * tile_d * 4
        + tile_n * tile_d * 4
    )
    y, stats = pl.pallas_call(
        _matmul_stats_kernel,
        out_shape=(
            jax.ShapeDtypeStruct((n, d_out), jnp.bfloat16),
            jax.ShapeDtypeStruct((2, d_out), jnp.float32),
        ),
        grid=(d_out // tile_d, n // tile_n),
        in_specs=[
            pl.BlockSpec((tile_n, d_in), lambda j, i: (i, 0)),
            pl.BlockSpec((d_in, tile_d), lambda j, i: (0, j)),
        ],
        out_specs=(
            pl.BlockSpec((tile_n, tile_d), lambda j, i: (i, j)),
            pl.BlockSpec((2, tile_d), lambda j, i: (0, j)),
        ),
        compiler_params=pltpu.CompilerParams(
            dimension_semantics=("parallel", "arbitrary"),
            vmem_limit_bytes=_vmem_limit_bytes(est1),
        ),
    )(x_bf, wt_bf16)

    return pl.pallas_call(
        functools.partial(_bn_apply_kernel, eps=eps, inv_n=1.0 / n),
        out_shape=jax.ShapeDtypeStruct((n, d_out), x.dtype),
        grid=(d_out // tile_d, n // tile_n),
        in_specs=[
            pl.BlockSpec((tile_n, tile_d), lambda j, i: (i, j)),
            pl.BlockSpec((2, tile_d), lambda j, i: (0, j)),
            pl.BlockSpec((2, tile_d), lambda j, i: (0, j)),
        ],
        out_specs=pl.BlockSpec((tile_n, tile_d), lambda j, i: (i, j)),
        compiler_params=pltpu.CompilerParams(
            dimension_semantics=("parallel", "parallel"),
        ),
    )(y, stats, bn_params)


def projector_ref(x, w, b, gamma, beta, *, eps=1e-5):
    """Pure-JAX reference (PyTorch Linear + BatchNorm1d(train) + ReLU)."""
    y = (jnp.dot(x, w.T, precision=lax.Precision.HIGHEST) + b[None, :]).astype(
        jnp.float32
    )
    mean = jnp.mean(y, axis=0, keepdims=True)
    var = jnp.mean((y - mean) ** 2, axis=0, keepdims=True)
    y_hat = (y - mean) * lax.rsqrt(var + eps)
    return jnp.maximum(y_hat * gamma[None, :] + beta[None, :], 0.0).astype(x.dtype)


# ----------------------------------------------------------------------------
# Classifier fc kernel: logits = set_feat @ W_fc^T + b_fc (lane-dense, 1 step)
# ----------------------------------------------------------------------------
def _fc_kernel(x_ref, w_ref, b_ref, o_ref):
    o_ref[...] = (
        jnp.dot(x_ref[...], w_ref[...], preferred_element_type=jnp.float32)
        + b_ref[...].astype(jnp.float32)
    ).astype(o_ref.dtype)


def fc_forward(x, wt_pad, b_pad, num_classes):
    """x: (B, D); wt_pad: (D, C_pad); b_pad: (1, C_pad). Returns (B, num_classes)."""
    batch, d_in = x.shape
    c_pad = wt_pad.shape[1]
    out = pl.pallas_call(
        _fc_kernel,
        out_shape=jax.ShapeDtypeStruct((batch, c_pad), x.dtype),
        grid=(1,),
        in_specs=[
            pl.BlockSpec((batch, d_in), lambda i: (0, 0)),
            pl.BlockSpec((d_in, c_pad), lambda i: (0, 0)),
            pl.BlockSpec((1, c_pad), lambda i: (0, 0)),
        ],
        out_specs=pl.BlockSpec((batch, c_pad), lambda i: (0, 0)),
    )(x, wt_pad, b_pad)
    return out[:, :num_classes]


# ----------------------------------------------------------------------------
if __name__ == "__main__":
    key = jax.random.PRNGKey(0)
    keys = jax.random.split(key, 8)

    batch_size = 2      # WSI bags
    n_inst = 8          # instances (patches) per bag
    d_in = 256          # small stand-in for 768
    d_out = 256
    num_classes = 10
    n_total = batch_size * n_inst   # 16 flattened instances

    # TODO(synk): the frozen dinov2 ViT backbone is not translated; instance
    # features stand in for its output on the flattened (B*inst, ...) view.
    feats = jax.random.normal(keys[0], (n_total, d_in), dtype=jnp.float32)

    # Projector parameters (Linear + BatchNorm1d, affine perturbed from defaults).
    w_proj = jax.random.normal(keys[1], (d_out, d_in), dtype=jnp.float32) * (
        1.0 / jnp.sqrt(d_in)
    )
    b_proj = 0.1 * jax.random.normal(keys[2], (d_out,), dtype=jnp.float32)
    gamma = 1.0 + 0.1 * jax.random.normal(keys[3], (d_out,), dtype=jnp.float32)
    beta = 0.1 * jax.random.normal(keys[4], (d_out,), dtype=jnp.float32)

    wt_bf16, bn_params = prepare_projector_params(w_proj, gamma, beta, b_proj)
    ref = projector_ref(feats, w_proj, b_proj, gamma, beta)

    # Fused path: tile_d=128 -> 2 parallel stripes are actually exercised.
    inst_feat = projector_forward(feats, wt_bf16, bn_params, tile_d=128)
    inst_feat = jax.block_until_ready(inst_feat)
    assert inst_feat.shape == (n_total, d_out)
    assert jnp.allclose(inst_feat, ref, atol=3e-2, rtol=3e-2), "fused projector mismatch"

    # Two-pass N-tiled path (for bags too large to keep resident in VMEM).
    inst_feat_t = projector_forward_tiled(
        feats, wt_bf16, bn_params, tile_d=128, tile_n=8
    )
    inst_feat_t = jax.block_until_ready(inst_feat_t)
    assert inst_feat_t.shape == (n_total, d_out)
    assert jnp.allclose(inst_feat_t, ref, atol=5e-2, rtol=5e-2), "tiled projector mismatch"

    # TODO(synk): SetTransformer / MaxWelling / DeepSet set pooling is not
    # translated; mean pooling over instances stands in to feed the fc kernel.
    set_feat = jnp.mean(inst_feat.reshape(batch_size, n_inst, d_out), axis=1)

    fc_w = jax.random.normal(keys[5], (num_classes, d_out), dtype=jnp.float32) * (
        1.0 / jnp.sqrt(d_out)
    )
    fc_b = 0.05 * jax.random.normal(keys[6], (num_classes,), dtype=jnp.float32)
    fc_wt, fc_bias, _ = prepare_fc_params(fc_w, fc_b)

    logits = fc_forward(set_feat, fc_wt, fc_bias, num_classes)
    logits = jax.block_until_ready(logits)
    logits_ref = (
        jnp.dot(set_feat, fc_w.T, precision=lax.Precision.HIGHEST) + fc_b[None, :]
    )
    assert logits.shape == (batch_size, num_classes)
    assert jnp.allclose(logits, logits_ref, atol=1e-2, rtol=1e-2), "fc mismatch"

    print("KERNEL_OK")
</pallas_src>

<mosaic_0001>
module attributes {stable_mosaic.version = 11 : i64} {
  func.func @_projector_fused_kernel(%arg0: i32, %arg1: memref<16x256xbf16, #tpu.memory_space<vmem>>, %arg2: memref<256x128xbf16, #tpu.memory_space<vmem>>, %arg3: memref<2x128xf32, #tpu.memory_space<vmem>>, %arg4: memref<16x128xf32, #tpu.memory_space<vmem>>) attributes {dimension_semantics = [#tpu.dimension_semantics<parallel>], iteration_bounds = array<i64: 2>, scalar_prefetch = 0 : i64, scratch_operands = 0 : i64, tpu.core_type = #tpu.core_type<tc>, window_params = [{pipeline_mode = #tpu.pipeline_mode<synchronous>, transform_indices = @transform_0, window_bounds = array<i64: 16, 256>}, {transform_indices = @transform_1, window_bounds = array<i64: 256, 128>}, {transform_indices = @transform_2, window_bounds = array<i64: 2, 128>}, {transform_indices = @transform_3, window_bounds = array<i64: 16, 128>}]} {
    %c0 = arith.constant 0 : index
    %c0_0 = arith.constant 0 : index
    %0 = vector.load %arg1[%c0, %c0_0] : memref<16x256xbf16, #tpu.memory_space<vmem>>, vector<16x256xbf16>
    %c0_1 = arith.constant 0 : index
    %c0_2 = arith.constant 0 : index
    %1 = vector.load %arg2[%c0_1, %c0_2] : memref<256x128xbf16, #tpu.memory_space<vmem>>, vector<256x128xbf16>
    %cst = arith.constant dense<0.000000e+00> : vector<16x128xf32>
    %2 = tpu.matmul %0, %1, %cst {dimension_numbers = #tpu.dot_dimension_numbers<[1], [0], [0], [1], [0, 0, 1, 1], [], []>} : vector<16x256xbf16>, vector<256x128xbf16>, vector<16x128xf32> -> vector<16x128xf32>
    %cst_3 = arith.constant dense<0.000000e+00> : vector<128xf32>
    %3 = vector.multi_reduction <add>, %2, %cst_3 [0] : vector<16x128xf32> to vector<128xf32>
    %4 = vector.shape_cast %3 : vector<128xf32> to vector<1x128xf32>
    %cst_4 = arith.constant 1.600000e+01 : f32
    %5 = vector.broadcast %cst_4 : f32 to vector<1x128xf32>
    %6 = arith.divf %4, %5 : vector<1x128xf32>
    %7 = vector.broadcast %6 : vector<1x128xf32> to vector<16x128xf32>
    %8 = arith.subf %2, %7 : vector<16x128xf32>
    %9 = arith.mulf %8, %8 : vector<16x128xf32>
    %cst_5 = arith.constant dense<0.000000e+00> : vector<128xf32>
    %10 = vector.multi_reduction <add>, %9, %cst_5 [0] : vector<16x128xf32> to vector<128xf32>
    %11 = vector.shape_cast %10 : vector<128xf32> to vector<1x128xf32>
    %cst_6 = arith.constant 1.600000e+01 : f32
    %12 = vector.broadcast %cst_6 : f32 to vector<1x128xf32>
    %13 = arith.divf %11, %12 : vector<1x128xf32>
    %cst_7 = arith.constant 9.99999974E-6 : f32
    %14 = vector.broadcast %cst_7 : f32 to vector<1x128xf32>
    %15 = arith.addf %13, %14 : vector<1x128xf32>
    %16 = math.rsqrt %15 : vector<1x128xf32>
    %c0_8 = arith.constant 0 : index
    %c0_9 = arith.constant 0 : index
    %17 = vector.load %arg3[%c0_8, %c0_9] : memref<2x128xf32, #tpu.memory_space<vmem>>, vector<1x128xf32>
    %c1 = arith.constant 1 : index
    %c0_10 = arith.constant 0 : index
    %18 = vector.load %arg3[%c1, %c0_10] : memref<2x128xf32, #tpu.memory_space<vmem>>, vector<1x128xf32>
    %19 = arith.mulf %17, %16 : vector<1x128xf32>
    %20 = vector.broadcast %19 : vector<1x128xf32> to vector<16x128xf32>
    %21 = arith.mulf %8, %20 : vector<16x128xf32>
    %22 = vector.broadcast %18 : vector<1x128xf32> to vector<16x128xf32>
    %23 = arith.addf %21, %22 : vector<16x128xf32>
    %cst_11 = arith.constant 0.000000e+00 : f32
    %24 = vector.broadcast %cst_11 : f32 to vector<16x128xf32>
    %25 = arith.maximumf %23, %24 : vector<16x128xf32>
    %c0_12 = arith.constant 0 : index
    %c0_13 = arith.constant 0 : index
    %26 = vector.load %arg4[%c0_12, %c0_13] : memref<16x128xf32, #tpu.memory_space<vmem>>, vector<16x128xf32>
    tpu.vector_store %arg4[%c0_12, %c0_13], %25 {strides = array<i32>} : memref<16x128xf32, #tpu.memory_space<vmem>>, vector<16x128xf32>,
    return
  }
  func.func @transform_0(%arg0: i32) -> (i32, i32) {
    %c0_i32 = arith.constant 0 : i32
    %c0_i32_0 = arith.constant 0 : i32
    %c0_i32_1 = arith.constant 0 : i32
    return %c0_i32, %c0_i32_0 : i32, i32
  }
  func.func @transform_1(%arg0: i32) -> (i32, i32) {
    %c0_i32 = arith.constant 0 : i32
    %c0_i32_0 = arith.constant 0 : i32
    return %c0_i32, %arg0 : i32, i32
  }
  func.func @transform_2(%arg0: i32) -> (i32, i32) {
    %c0_i32 = arith.constant 0 : i32
    %c0_i32_0 = arith.constant 0 : i32
    return %c0_i32, %arg0 : i32, i32
  }
  func.func @transform_3(%arg0: i32) -> (i32, i32) {
    %c0_i32 = arith.constant 0 : i32
    %c0_i32_0 = arith.constant 0 : i32
    return %c0_i32, %arg0 : i32, i32
  }
}

</mosaic_0001>

<bundles_post_ra>
// kernel: tpu_custom_call.1
= control target key start
LH: loop header
LB: loop body
LE: loop exit
PB: predicated region body
PF: predicated region fallthrough
CT: control target
= control target key end

     0   :  { %8 = vsyncpa [#allocation3], 0  ;;  %s1156_s0 = inlined_call_operand.hbm [shape: bf16[16,256], index: 0, kind: input, shape index: {}]   ;;  %s1157_s1 = inlined_call_operand.hbm [shape: bf16[256,256], index: 1, kind: input, shape index: {}]   ;;  %s1158_s2 = inlined_call_operand.hbm [shape: f32[2,256], index: 2, kind: input, shape index: {}]   ;;  %s1159_s3 = inlined_call_operand.hbm [shape: f32[16,256], index: 3, kind: output, shape index: {}]  }
   0x1   :  { %9 = vsyncpa [#allocation6], 0 }
   0x2   :  { %11 = vsyncpa [#allocation6 + $0x1], 0 }
   0x3   :  { %12 = vsyncpa [#allocation4], 0 }
   0x4   :  { %14 = vsyncpa [#allocation4 + $0x1], 0  ;;  %s910_s12 = smov 0   ;;  %s912_s13 = smov 0  }
   0x5   :  { %s914_s14 = smov 0   ;;  %s916_s15 = smov 0  }
   0x6 LB: > { %s931_s16 = sadd.s32 1, %s877_s15   ;;  %s48_s17 = sadd.s32 1, %s873_s14  ;;  %s877_s15 = sphi %s916_s15, %s1181_s15   ;;  %s873_s14 = sphi %s914_s14, %s1180_s14   ;;  %s869_s13 = sphi %s912_s13, %s1179_s13   ;;  %s865_s12 = sphi %s910_s12, %s1178_s12  }
   0x7   : > { %s45_s18 = ssub.s32 %s877_s15, %s931_s16  ;;  %p55_p0 = scmp.ne.s32.totalorder %s873_s14, %s869_s13 }
   0x8   : > { %p46_p1 = scmp.eq.s32.totalorder %s45_s18, 0  ;;  %p56_p2 = scmp.eq.s32.totalorder %s877_s15, 0 }
   0x9   : > { %p663_p5 = scmp.lt.s32.totalorder %s877_s15, 2  ;;  %s150_s20 = sand.u32 1, %s877_s15  }
   0xa   : > { %s941_s19 = scalar_select %p46_p1, %s873_s14, %s48_s17  }
   0xb   : > { %p57_p4 = por %p56_p2, %p55_p0  ;;  %s152_s21 = sand.u32 1, %s873_s14  }
   0xc   : > { %s583_s22 = sshll.u32 %s152_s21, 7  ;;  %s584_s23 = sshll.u32 %s877_s15, 6 }
   0xd   : > { %s955_s26 = scalar_lea.hbm %s1157_s1, %s584_s23  ;;  %s154_s27 = scalar_lea.vmem [#allocation5], %s583_s22 }
   0xe   : > { %s160_s28 = sshll.u32 %s154_s27, 4  ;;  %p959_p6 = pnand %p663_p5, %p57_p4  ;;  %s957_s28 = int_to_ptr.vmem [resolvable:$true] %s160_s28 }
   0xf   : > { %s963_s30 = scalar_lea.sflag [#allocation6], %s150_s20  ;;  %s727_s4 = scalar_lea.hbm %s955_s26, 2048 }
  0x10   : > { %p728_p7 = scmp.ne.s32.totalorder %s955_s26, %s727_s4  ;;  %p1161_p8 = pneg %p959_p6 }
  0x11   : > { %s732_s7 = scalar_lea.hbm %s1157_s1, 4096  ;;  %p733_p11 = scmp.lt.s32.totalorder %s955_s26, %s1157_s1 }
  0x12   : > { %p730_p9 = pnand %p1161_p8, %p728_p7  ;;  %p734_p12 = scmp.lt.s32.totalorder %s732_s7, %s727_s4 }
  0x14   : > { %p731_p10 = pneg %p730_p9  ;;  %p735_p13 = por %p734_p12, %p733_p11 }
  0x16   : > { %p736_p1 = pnand %p735_p13, %p731_p10 }
  0x18   : > { %739 = shalt.err (!%p736_p1)
}
  0x19   : > { %s740_s10 = scalar_lea.vmem %s957_s28, 2048  ;;  %s879_s11 = smov [#allocation5]  }
  0x1a   : > { %p741_p2 = scmp.ne.s32.totalorder %s957_s28, %s740_s10  ;;  %s745_s17 = sshll.u32 %s879_s11, 4  ;;  %s746_s17 = int_to_ptr.vmem [resolvable:$false] %s745_s17 }
  0x1b   : > { %s747_s18 = scalar_lea.vmem %s746_s17, 4096  ;;  %p748_p7 = scmp.lt.s32.totalorder %s957_s28, %s746_s17 }
  0x1c   : > { %p743_p4 = pnand %p741_p2, %p1161_p8  ;;  %p749_p9 = scmp.lt.s32.totalorder %s747_s18, %s740_s10 }
  0x1e   : > { %p744_p5 = pneg %p743_p4  ;;  %p750_p3 = por %p749_p9, %p748_p7 }
  0x20   : > { %p751_p11 = pnand %p750_p3, %p744_p5 }
  0x22   : > { %754 = shalt.err (!%p751_p11)
}
  0x23   : > { %s880_s20 = smov 128   ;;  %s881_s22 = smov 64  }
  0x24   : > { %s882_s23 = smov 4   ;;  %s992_s24 = sadd.s32 4294967295, %s877_s15  }
  0x25   : > { %654 = dma.hbm_to_vmem [thread:$0]  (!%p959_p6), %s955_s26, 2048, %s957_s28, %s963_s30, %s880_s20, %s881_s22, %s882_s23  }
  0x26   : > { %s579_s25 = sadd.s32 4294967294, %s877_s15   ;;  %p61_p3 = scmp.ne.s32.totalorder %s869_s13, %s865_s12 }
  0x27   : > { %p1160_p10 = scmp.eq.s32.totalorder %s992_s24, 0  ;;  %p111_p12 = scmp.eq.s32.totalorder %s992_s24, 1 }
  0x28   : > { %p117_p13 = scmp.eq.s32.totalorder %s579_s25, 1  ;;  %p580_p1 = scmp.ge.s32.totalorder %s877_s15, 1 }
  0x29   : > { %p1002_p2 = por %p1160_p10, %p61_p3  ;;  %p1009_p4 = por %p111_p12, %p55_p0 }
  0x2a   : > { %p1013_p5 = por %p117_p13, %p61_p3  ;;  %p124_p7 = scmp.lt.s32.totalorder %s877_s15, 3 }
  0x2b   : > { %s1165_s27 = scalar_select %p1002_p2, 1, 0 }
  0x2c   : > { %s1166_s26 = scalar_select %p1009_p4, 1, 0 }
  0x2d   : > { %s1167_s28 = scalar_select %p1013_p5, 1, 0 }
  0x2e   : > { %p1018_p9 = pnand %p580_p1, %p124_p7  ;;  %s883_s5 = smov [#allocation2]  }
  0x2f   : > { %s136_s6 = sshll.u32 %s883_s5, 4  ;;  %s585_s7 = sshll.u32 %s152_s21, 1  ;;  %s137_s6 = int_to_ptr.vmem [resolvable:$true] %s136_s6 }
  0x30   : > { %p647_p11 = pneg %p1018_p9  ;;  %s586_s8 = sshll.u32 %s877_s15, 5 }
  0x31   : > { %s1036_s17 = scalar_lea.hbm %s1158_s2, %s586_s8  ;;  %s174_s18 = scalar_lea.vmem [#allocation7], %s585_s7 }
  0x32   : > { %p1029_p0 = pnand %p647_p11, %p1160_p10  ;;  %s181_s22 = sshll.u32 %s174_s18, 4  ;;  %s1038_s22 = int_to_ptr.vmem [resolvable:$true] %s181_s22 }
  0x33   : > { %s766_s23 = scalar_lea.vmem %s137_s6, 256  ;;  %p774_p7 = scmp.lt.s32.totalorder %s137_s6, %s137_s6 }
  0x34   : > { %p757_p3 = pneg %p1029_p0  ;;  %p767_p12 = scmp.ne.s32.totalorder %s137_s6, %s766_s23 }
  0x35   : > { %p775_p11 = scmp.lt.s32.totalorder %s766_s23, %s766_s23 }
  0x36   : > { %p769_p13 = pnand %p767_p12, %p757_p3 }
  0x37   : > { %p776_p10 = por %p775_p11, %p774_p7 }
  0x38   : > { %p770_p1 = pneg %p769_p13 }
  0x3a   : > { %p777_p8 = pnand %p776_p10, %p770_p1 }
  0x3c   : > { %780 = shalt.err (!%p777_p8)
}
  0x3d   : > { %s884_s21 = smov 8   ;;  %s781_s7 = scalar_lea.hbm %s1036_s17, 32 }
  0x3e   : > { %650 = dma.hbm_to_vmem [thread:$0]  (!%p1029_p0), %s1156_s0, 256, %s137_s6, [#allocation3], %s880_s20, %s880_s20, %s884_s21  }
  0x3f   : > { %p782_p3 = scmp.ne.s32.totalorder %s1036_s17, %s781_s7  ;;  %p1170_p12 = pneg %p959_p6 }
  0x40   : > { %s786_s9 = scalar_lea.hbm %s1158_s2, 64  ;;  %p787_p8 = scmp.lt.s32.totalorder %s1036_s17, %s1158_s2 }
  0x41   : > { %p784_p13 = pnand %p782_p3, %p1170_p12  ;;  %p788_p1 = scmp.lt.s32.totalorder %s786_s9, %s781_s7 }
  0x43   : > { %p785_p10 = pneg %p784_p13  ;;  %p789_p7 = por %p788_p1, %p787_p8 }
  0x45   : > { %p790_p11 = pnand %p789_p7, %p785_p10 }
  0x47   : > { %793 = shalt.err (!%p790_p11)
}
  0x48   : > { %s794_s20 = scalar_lea.vmem %s1038_s22, 32  ;;  %p1171_p3 = pmov %p1170_p12 }
  0x49   : > { %p795_p0 = scmp.ne.s32.totalorder %s1038_s22, %s794_s20  ;;  %s885_s6 = smov [#allocation7]  }
  0x4a   : > { %s799_s23 = sshll.u32 %s885_s6, 4  ;;  %s800_s23 = int_to_ptr.vmem [resolvable:$false] %s799_s23 }
  0x4b   : > { %p797_p12 = pnand %p795_p0, %p1171_p3  ;;  %s801_s21 = scalar_lea.vmem %s800_s23, 64 }
  0x4c   : > { %p802_p5 = scmp.lt.s32.totalorder %s1038_s22, %s800_s23  ;;  %p803_p4 = scmp.lt.s32.totalorder %s801_s21, %s794_s20 }
  0x4d   : > { %p798_p13 = pneg %p797_p12 }
  0x4e   : > { %p804_p2 = por %p803_p4, %p802_p5 }
  0x50   : > { %p805_p8 = pnand %p804_p2, %p798_p13 }
  0x52   : > { %808 = shalt.err (!%p805_p8)
}
  0x53   : > { %657 = dma.hbm_to_vmem [thread:$0]  (!%p959_p6), %s1036_s17, 32, %s1038_s22, %s963_s30  }
  0x54   : > { %190 = sbr.rel (%p1018_p9) target bundleno = 406 (0x196), region = 32  ;;  %p1172_p10 = scmp.eq.s32.totalorder (!%p1018_p9), %s992_s24, 0 }
  0x59   : > { %852 = dma.done.wait (%p1172_p10), [#allocation3], 256   ;;  %p1173_p1 = pmov %p1172_p10 }
  0x5a   : > { %s196_s25 = sand.u32 1, %s992_s24   ;;  %s1080_s5 = sand.u32 1, %s869_s13  }
  0x5b   : > { %854 = vsyncadd (%p1173_p1), [#allocation3], 4294967040  ;;  %s589_s29 = sshll.u32 %s1080_s5, 7  ;;  %s197_s7 = scalar_lea.sflag [#allocation6], %s196_s25 }
  0x5c   : > { %s1083_s8 = scalar_lea.vmem [#allocation5], %s589_s29  ;;  %p1174_p6 = scmp.ne.s32.totalorder %s1165_s27, 0 }
  0x5e   : > { %856 = dma.done.wait (%p1174_p6), %s197_s7, 2080  }
  0x5f   : > { %858 = vsyncadd (%p1174_p6), %s197_s7, 4294965216  ;;  %v706_v0 = vld [vmem:[%s1083_s8 + $0x78] sm:$0xff]   ;;  %v708_v2 = vld [vmem:[%s1083_s8 + $0x70] sm:$0xff]   ;;  %v445_v45 = vlaneseq  ;;  %s590_s30 = sshll.u32 %s1080_s5, 1  ;;  %s591_s27 = sshll.u32 %s1080_s5, 4 }
  0x60   : > { %v707_v1 = vld [vmem:[%s1083_s8 + $0x38] sm:$0xff]   ;;  %615 = vmatprep.subr.bf16.mxu0 %v706_v0  ;;  %v709_v3 = vld [vmem:[%s1083_s8 + $0x30] sm:$0xff]   ;;  %v710_v4 = vld [vmem:[%s1083_s8 + $0x68] sm:$0xff]   ;;  %s209_s4 = scalar_lea.vmem [#allocation7], %s590_s30  ;;  %s236_s17 = scalar_lea.vmem [#allocation8], %s591_s27 }
  0x61   : > { %616 = vmatpush3.bf16.msra.mxu0 %v707_v1  ;;  %v711_v5 = vld [vmem:[%s1083_s8 + $0x28] sm:$0xff]   ;;  %v712_v6 = vld [vmem:[%s1083_s8 + $0x60] sm:$0xff]   ;;  %v714_v8 = vld [vmem:[%s1083_s8 + $0x58] sm:$0xff]   ;;  %v446_v46 = vshrl.u32 %v445_v45, 7  ;;  %s474_s22 = sshll.u32 %s236_s17, 4  ;;  %s612_s10 = sshll.u32 %s992_s24, 7  ;;  %s1108_s22 = int_to_ptr.vmem [resolvable:$true] %s474_s22 }
  0x62   : > { %617 = vmatprep.subr.bf16.mxu0 %v708_v2  ;;  %v713_v7 = vld [vmem:[%s1083_s8 + $0x20] sm:$0xff]   ;;  %v715_v9 = vld [vmem:[%s1083_s8 + $0x18] sm:$0xff]   ;;  %v716_v10 = vld [vmem:[%s1083_s8 + $0x50] sm:$0xff]   ;;  %s1113_s18 = scalar_lea.hbm %s1159_s3, %s612_s10  ;;  %s462_s20 = scalar_lea.sflag [#allocation4], %s1080_s5 }
  0x63   : > { %v724_v11 = vld [vmem:[#allocation2 + $0x4] ss:$8 sps:$4 sm:$0xff]   ;;  %v718_v13 = vld [vmem:[%s1083_s8 + $0x48] sm:$0xff]   ;;  %v720_v15 = vld [vmem:[%s1083_s8 + $0x40] sm:$0xff]   ;;  %v447_v48 = vsub.s32 0, %v446_v46  ;;  %s809_s6 = scalar_lea.vmem %s1108_s22, 256 }
  0x64   : > { %v717_v12 = vld [vmem:[%s1083_s8 + $0x10] sm:$0xff]   ;;  %410 = vmatprep.mubr.bf16.mxu0 %v724_v11  ;;  %v719_v14 = vld [vmem:[%s1083_s8 + $0x8] sm:$0xff]   ;;  %v721_v16 = vld [vmem:[%s1083_s8] sm:$0xff]   ;;  %p810_p2 = scmp.ne.s32.totalorder %s1108_s22, %s809_s6  ;;  %p1175_p4 = scmp.ne.s32.totalorder %s1166_s26, 0 }
  0x65   : > { %618 = vmatpush3.bf16.msra.mxu0 %v709_v3  ;;  %v722_v17 = vld [vmem:[#allocation2] ss:$8 sps:$4 sm:$0xff]   ;;  %v442_v47 = vld [vmem:[%s209_s4] sm:$0x1]  ;;  %v610_v52 = vld [vmem:[%s209_s4 + $0x1] ss:$0 sm:$0xff] }
  0x66   : > { %619 = vmatprep.subr.bf16.mxu0 %v710_v4  ;;  %p811_p5 = pnand %p810_p2, %p1175_p4  ;;  %s886_s24 = smov [#allocation8]  }
  0x67   : > { %s813_s23 = sshll.u32 %s886_s24, 4  ;;  %s814_s23 = int_to_ptr.vmem [resolvable:$false] %s813_s23 }
  0x68   : > { %p812_p9 = pneg %p811_p5  ;;  %s815_s21 = scalar_lea.vmem %s814_s23, 512 }
  0x69   : > { %620 = vmatpush3.bf16.msra.mxu0 %v711_v5  ;;  %p816_p7 = scmp.lt.s32.totalorder %s1108_s22, %s814_s23  ;;  %p817_p11 = scmp.lt.s32.totalorder %s815_s21, %s809_s6 }
  0x6a   : > { %621 = vmatprep.subr.bf16.mxu0 %v712_v6 }
  0x6b   : > { %p818_p0 = por %p817_p11, %p816_p7 }
  0x6d   : > { %622 = vmatpush3.bf16.msra.mxu0 %v713_v7  ;;  %p819_p3 = pnand %p818_p0, %p812_p9 }
  0x6e   : > { %623 = vmatprep.subr.bf16.mxu0 %v714_v8 }
  0x71   : > { %624 = vmatpush3.bf16.msra.mxu0 %v715_v9 }
  0x72   : > { %625 = vmatprep.subr.bf16.mxu0 %v716_v10 }
  0x75   : > { %626 = vmatpush3.bf16.msra.mxu0 %v717_v12 }
  0x76   : > { %627 = vmatprep.subr.bf16.mxu0 %v718_v13 }
  0x79   : > { %628 = vmatpush3.bf16.msra.mxu0 %v719_v14 }
  0x7a   : > { %629 = vmatprep.subr.bf16.mxu0 %v720_v15 }
  0x7d   : > { %630 = vmatpush3.bf16.msra.mxu0 %v721_v16 }
  0x80   : > { %411 = vmatmul.mubr.bf16.vlgmr.msra.gmra.mxu0 %v722_v17 }
 0x140   : > { %v631_v18 = vpop.f32.mrf.mxu0 }
 0x142   : > { %v632_v19 = vpop.f32.mrf.mxu0 }
 0x143   : > { %v633_v22 = vadd.f32 %v632_v19, %v631_v18 }
 0x144   : > { %v634_v20 = vpop.f32.mrf.mxu0 }
 0x146   : > { %v635_v21 = vpop.f32.mrf.mxu0 }
 0x147   : > { %v636_v23 = vadd.f32 %v635_v21, %v634_v20 }
 0x149   : > { %v419_v24 = vadd.f32 %v636_v23, %v633_v22 }
 0x14b   : > { %v420_v25 = vrot.slane %v419_v24, 4 }
 0x14d   : > { %v421_v26 = vadd.f32 %v420_v25, %v419_v24 }
 0x14f   : > { %v422_v27 = vrot.slane %v421_v26, 2 }
 0x151   : > { %v423_v28 = vadd.f32 %v422_v27, %v421_v26 }
 0x153   : > { %v424_v29 = vrot.slane %v423_v28, 1 }
 0x155   : > { %v425_v30 = vadd.f32 %v424_v29, %v423_v28 }
 0x157   : > { %v427_v31 = vmul.f32 0.0625, %v425_v30 }
 0x159   : > { %v428_v32 = vsub.f32 %v633_v22, %v427_v31  ;;  %v429_v33 = vsub.f32 %v636_v23, %v427_v31 }
 0x15b   : > { %v430_v34 = vmul.f32 %v428_v32, %v428_v32  ;;  %v431_v35 = vmul.f32 %v429_v33, %v429_v33 }
 0x15d   : > { %v432_v36 = vadd.f32 %v431_v35, %v430_v34 }
 0x15f   : > { %v433_v37 = vrot.slane %v432_v36, 4 }
 0x161   : > { %v434_v38 = vadd.f32 %v433_v37, %v432_v36 }
 0x163   : > { %v435_v39 = vrot.slane %v434_v38, 2 }
 0x165   : > { %v436_v40 = vadd.f32 %v435_v39, %v434_v38 }
 0x167   : > { %v437_v41 = vrot.slane %v436_v40, 1 }
 0x169   : > { %v438_v42 = vadd.f32 %v437_v41, %v436_v40 }
 0x16b   : > { %v439_v43 = vmul.f32 0.0625, %v438_v42 }
 0x16d   : > { %v440_v44 = vadd.f32 1e-05, %v439_v43 }
 0x16f   : > { %725 = vrsqrt.f32 %v440_v44 }
 0x17c   : > { %v726_v49 = vpop.eup %725 }
 0x17d   : > { %v444_v50 = vmul.f32 %v726_v49, %v442_v47 }
 0x17f   : > { %v448_v51 = vrot.slane %v444_v50, %v447_v48 }
 0x181   : > { %v449_v53 = vmul.f32 %v448_v51, %v428_v32  ;;  %v450_v54 = vmul.f32 %v448_v51, %v429_v33 }
 0x183   : > { %v455_v55 = vadd.f32 %v610_v52, %v449_v53  ;;  %v456_v56 = vadd.f32 %v610_v52, %v450_v54 }
 0x185   : > { %v457_v57 = vmax.f32 %v455_v55, 0.0  ;;  %v458_v58 = vmax.f32 %v456_v56, 0.0 }
 0x187   : > { %459 = vst [vmem:[%s236_s17] sm:$0xff] %v457_v57  ;;  %460 = vst [vmem:[%s236_s17 + $0x8] sm:$0xff] %v458_v58 }
 0x188   : > { %822 = shalt.err (!%p819_p3)
}
 0x189   : > { %s823_s25 = scalar_lea.hbm %s1113_s18, 256  ;;  %s827_s8 = scalar_lea.hbm %s1159_s3, 512 }
 0x18a   : > { %p824_p12 = scmp.ne.s32.totalorder %s1113_s18, %s823_s25  ;;  %p828_p10 = scmp.lt.s32.totalorder %s1113_s18, %s1159_s3 }
 0x18b   : > { %p829_p1 = scmp.lt.s32.totalorder %s827_s8, %s823_s25 }
 0x18c   : > { %p825_p13 = pnand %p824_p12, %p1175_p4 }
 0x18d   : > { %p830_p6 = por %p829_p1, %p828_p10 }
 0x18e   : > { %p826_p8 = pneg %p825_p13 }
 0x190   : > { %p831_p2 = pnand %p830_p6, %p826_p8 }
 0x192   : > { %834 = shalt.err (!%p831_p2)
}
 0x193   : > { %s887_s4 = smov 128   ;;  %s888_s17 = smov 256  }
 0x194   : > { %s889_s10 = smov 8  }
 0x195   : > { %645 = dma.vmem_to_hbm [thread:$0]  (%p1175_p4), %s1108_s22, 256, %s1113_s18, %s462_s20, %s887_s4, %s888_s17, %s889_s10  }
 0x196 PF: > { %s489_s9 = sand.u32 1, %s865_s12   ;;  %p1176_p5 = scmp.ne.s32.totalorder %s1167_s28, 0 }
 0x197   : > { %p1177_p9 = scmp.ge.s32.totalorder %s877_s15, 2  ;;  %s490_s11 = scalar_lea.sflag [#allocation4], %s489_s9 }
 0x199   : > { %p659_p7 = pnand %p1177_p9, %p1176_p5 }
 0x19b   : > { %p660_p11 = pneg %p659_p7 }
 0x19d   : > { %860 = dma.done.wait (%p660_p11), %s490_s11, 256  }
 0x19e   : > { %862 = vsyncadd (%p660_p11), %s490_s11, 4294967040  ;;  %p17_p0 = scmp.ge.s32.totalorder %s931_s16, 4   ;;  %s1178_s12 = smov %s869_s13 }
 0x19f   : > { %s1179_s13 = smov %s873_s14  ;;  %s1180_s14 = smov %s941_s19 }
 0x1a0   : > { %s1181_s15 = smov %s931_s16  ;;  %19 = sbr.rel (!%p17_p0) target bundleno = 6 (0x6), region = 93 }
 0x1a5   :  { %495 = vsyncpa [#allocation3], 1 }
 0x1a6   :  { %497 = vsyncpa [#allocation3 + $0x1], 1 }
 0x1a7   :  { %498 = vsyncpa [#allocation6], 1 }
 0x1a8   :  { %500 = vsyncpa [#allocation6 + $0x1], 1 }
 0x1a9   :  { %501 = vsyncpa [#allocation4], 1 }
 0x1aa   :  { %503 = vsyncpa [#allocation4 + $0x1], 1 }

</bundles_post_ra>
